<compile_context>
chip_gen: v7x
topology: tpu7x:2x2x1
jax: 0.10.0
libtpu: 0.0.40
codegen_flags: <defaults>
</compile_context>

<pallas_src>
import jax
import jax.numpy as jnp
from jax.experimental import pallas as pl
from jax.experimental.pallas import tpu as pltpu


def _fusion_kernel(f1_ref, f2_ref, sa_ref, sb_ref, b_ref, o_ref):
    # f1_ref, f2_ref: (tm, W)  lane-folded row tiles (VMEM, pipelined)
    # sa_ref, sb_ref: (W, G)   block-diagonal fused weights (VMEM, resident)
    # b_ref:          (1, 1)   fused bias scalar (SMEM)
    # o_ref:          (tm, G)  output tile (G lanes per row group)
    acc = jnp.dot(f1_ref[...], sa_ref[...], preferred_element_type=jnp.float32)
    acc = acc + jnp.dot(f2_ref[...], sb_ref[...],
                        preferred_element_type=jnp.float32)
    o_ref[...] = (acc + b_ref[0, 0]).astype(o_ref.dtype)


def mix_fusion_forward(feat1, feat2, score1, score2, params,
                       *, vmem_input_budget_bytes=8 * 1024 * 1024):
    """JAX/Pallas equivalent of mix_fusion.forward.

    feat1, feat2: (B, T, H).  score1/score2 are unused (the PyTorch module
    ignores them in forward).
    """
    del score1, score2  # unused by the reference forward
    w1, b1, w2, b2 = params  # w1: (2H, H), b1: (H,), w2: (H, 1), b2: (1,)
    B, T, H = feat1.shape
    M = B * T
    out_dtype = feat1.dtype

    # ---- algebraic fusion of the two linears, formed & kept in fp32 ----
    w1f = w1.astype(jnp.float32)
    w2f = w2.astype(jnp.float32)
    w_eff = w1f @ w2f                                             # (2H, 1)
    b_eff = (b1.astype(jnp.float32) @ w2f
             + b2.astype(jnp.float32)).reshape(1, 1)              # (1, 1)
    wa = w_eff[:H, 0]                                             # -> feat1
    wb = w_eff[H:, 0]                                             # -> feat2

    # ---- lane-fold: (M, H) -> (M/G, G*H) so tiles use all 128 lanes ----
    if H < 128 and 128 % H == 0 and M % (128 // H) == 0:
        G = 128 // H
    else:
        G = 1
    W = G * H
    Mf = M // G

    # Block-diagonal fused weights: S[g*H + h, g'] = (g == g') * w[h].
    eye_g = jnp.eye(G, dtype=jnp.float32)
    sa = jnp.kron(eye_g, wa.reshape(H, 1)).astype(feat1.dtype)    # (W, G)
    sb = jnp.kron(eye_g, wb.reshape(H, 1)).astype(feat1.dtype)    # (W, G)

    f1 = feat1.reshape(Mf, W)   # free row-major reshapes, no HBM copies
    f2 = feat2.reshape(Mf, W)

    # ---- VMEM-budgeted row tiling (2 inputs x 2 buffers x tm x W x bytes) ----
    itemsize = feat1.dtype.itemsize
    tm_cap = max(8, (vmem_input_budget_bytes // (4 * W * itemsize)) // 8 * 8)
    tm = Mf if Mf <= tm_cap else tm_cap
    grid = (pl.cdiv(Mf, tm),)   # ragged tail handled by implicit block padding

    out = pl.pallas_call(
        _fusion_kernel,
        out_shape=jax.ShapeDtypeStruct((Mf, G), out_dtype),
        grid=grid,
        in_specs=[
            pl.BlockSpec((tm, W), lambda i: (i, 0)),   # feat1 folded row tile
            pl.BlockSpec((tm, W), lambda i: (i, 0)),   # feat2 folded row tile
            pl.BlockSpec((W, G), lambda i: (0, 0)),    # sa (grid-invariant)
            pl.BlockSpec((W, G), lambda i: (0, 0)),    # sb (grid-invariant)
            pl.BlockSpec(memory_space=pltpu.MemorySpace.SMEM),  # bias scalar
        ],
        out_specs=pl.BlockSpec((tm, G), lambda i: (i, 0)),
        compiler_params=pltpu.CompilerParams(
            dimension_semantics=("parallel",),  # megacore sharding on v7x
        ),
    )(f1, f2, sa, sb, b_eff)

    # out[r, g] corresponds to original row r*G + g -> row-major reshape is
    # exactly the (B, T) order; emulate torch .squeeze() (drops size-1 dims).
    return jnp.squeeze(out.reshape(B, T, 1))


def init_params(key, rnn_hid_size):
    """Parameter init matching nn.Linear shapes (non-bidirectional branch):
      fc1: Linear(2H -> H)   -> w1 (2H, H), b1 (H,)
      fc2: Linear(H  -> 1)   -> w2 (H, 1),  b2 (1,)
    (weights stored transposed relative to PyTorch so x @ W + b applies)
    """
    H = rnn_hid_size
    k1, k2, k3, k4 = jax.random.split(key, 4)
    lim1 = 1.0 / jnp.sqrt(2.0 * H)
    lim2 = 1.0 / jnp.sqrt(1.0 * H)
    w1 = jax.random.uniform(k1, (2 * H, H), jnp.float32, -lim1, lim1)
    b1 = jax.random.uniform(k2, (H,), jnp.float32, -lim1, lim1)
    w2 = jax.random.uniform(k3, (H, 1), jnp.float32, -lim2, lim2)
    b2 = jax.random.uniform(k4, (1,), jnp.float32, -lim2, lim2)
    return (w1, b1, w2, b2)


if __name__ == "__main__":
    B, T, H = 2, 8, 32  # batch, seq, rnn_hid_size
    key = jax.random.PRNGKey(0)
    kf1, kf2, ks1, ks2, kp = jax.random.split(key, 5)

    feat1 = jax.random.normal(kf1, (B, T, H), jnp.float32)
    feat2 = jax.random.normal(kf2, (B, T, H), jnp.float32)
    score1 = jax.random.normal(ks1, (B, T), jnp.float32)  # unused by forward
    score2 = jax.random.normal(ks2, (B, T), jnp.float32)  # unused by forward

    params = init_params(kp, H)

    out = mix_fusion_forward(feat1, feat2, score1, score2, params)
    out = jax.block_until_ready(out)

    # Pure-JAX reference: the UNfused two-linear formulation (exact PyTorch
    # forward); the fused math differs only by fp rounding order.
    w1, b1, w2, b2 = params
    xr = jnp.concatenate((feat1, feat2), axis=2)
    ref = jnp.squeeze((xr @ w1 + b1) @ w2 + b2)
    assert out.shape == ref.shape == (B, T), (out.shape, ref.shape)
    assert jnp.allclose(out, ref, atol=1e-4, rtol=1e-4), (
        float(jnp.max(jnp.abs(out - ref))))

    print("KERNEL_OK")
</pallas_src>

<mosaic_0001>
module attributes {stable_mosaic.version = 11 : i64} {
  func.func @_fusion_kernel(%arg0: i32, %arg1: memref<4x128xf32, #tpu.memory_space<vmem>>, %arg2: memref<4x128xf32, #tpu.memory_space<vmem>>, %arg3: memref<128x4xf32, #tpu.memory_space<vmem>>, %arg4: memref<128x4xf32, #tpu.memory_space<vmem>>, %arg5: memref<1x1xf32, #tpu.memory_space<smem>>, %arg6: memref<4x4xf32, #tpu.memory_space<vmem>>) attributes {dimension_semantics = [#tpu.dimension_semantics<parallel>], iteration_bounds = array<i64: 1>, scalar_prefetch = 0 : i64, scratch_operands = 0 : i64, tpu.core_type = #tpu.core_type<tc>, window_params = [{transform_indices = @transform_0, window_bounds = array<i64: 4, 128>}, {transform_indices = @transform_1, window_bounds = array<i64: 4, 128>}, {pipeline_mode = #tpu.pipeline_mode<synchronous>, transform_indices = @transform_2, window_bounds = array<i64: 128, 4>}, {pipeline_mode = #tpu.pipeline_mode<synchronous>, transform_indices = @transform_3, window_bounds = array<i64: 128, 4>}, {transform_indices = @transform_4, window_bounds = array<i64: 1, 1>}, {transform_indices = @transform_5, window_bounds = array<i64: 4, 4>}]} {
    %c0 = arith.constant 0 : index
    %c0_0 = arith.constant 0 : index
    %0 = vector.load %arg1[%c0, %c0_0] : memref<4x128xf32, #tpu.memory_space<vmem>>, vector<4x128xf32>
    %c0_1 = arith.constant 0 : index
    %c0_2 = arith.constant 0 : index
    %1 = vector.load %arg3[%c0_1, %c0_2] : memref<128x4xf32, #tpu.memory_space<vmem>>, vector<128x4xf32>
    %cst = arith.constant dense<0.000000e+00> : vector<4x4xf32>
    %2 = tpu.matmul %0, %1, %cst {dimension_numbers = #tpu.dot_dimension_numbers<[1], [0], [0], [1], [0, 0, 1, 1], [], []>} : vector<4x128xf32>, vector<128x4xf32>, vector<4x4xf32> -> vector<4x4xf32>
    %c0_3 = arith.constant 0 : index
    %c0_4 = arith.constant 0 : index
    %3 = vector.load %arg2[%c0_3, %c0_4] : memref<4x128xf32, #tpu.memory_space<vmem>>, vector<4x128xf32>
    %c0_5 = arith.constant 0 : index
    %c0_6 = arith.constant 0 : index
    %4 = vector.load %arg4[%c0_5, %c0_6] : memref<128x4xf32, #tpu.memory_space<vmem>>, vector<128x4xf32>
    %cst_7 = arith.constant dense<0.000000e+00> : vector<4x4xf32>
    %5 = tpu.matmul %3, %4, %cst_7 {dimension_numbers = #tpu.dot_dimension_numbers<[1], [0], [0], [1], [0, 0, 1, 1], [], []>} : vector<4x128xf32>, vector<128x4xf32>, vector<4x4xf32> -> vector<4x4xf32>
    %6 = arith.addf %2, %5 : vector<4x4xf32>
    %c0_8 = arith.constant 0 : index
    %c0_9 = arith.constant 0 : index
    %7 = memref.load %arg5[%c0_8, %c0_9] : memref<1x1xf32, #tpu.memory_space<smem>>
    %8 = vector.broadcast %7 : f32 to vector<4x4xf32>
    %9 = arith.addf %6, %8 : vector<4x4xf32>
    %c0_10 = arith.constant 0 : index
    %c0_11 = arith.constant 0 : index
    %10 = vector.load %arg6[%c0_10, %c0_11] : memref<4x4xf32, #tpu.memory_space<vmem>>, vector<4x4xf32>
    tpu.vector_store %arg6[%c0_10, %c0_11], %9 {strides = array<i32>} : memref<4x4xf32, #tpu.memory_space<vmem>>, vector<4x4xf32>,
    return
  }
  func.func @transform_0(%arg0: i32) -> (i32, i32) {
    %c0_i32 = arith.constant 0 : i32
    %c0_i32_0 = arith.constant 0 : i32
    return %arg0, %c0_i32 : i32, i32
  }
  func.func @transform_1(%arg0: i32) -> (i32, i32) {
    %c0_i32 = arith.constant 0 : i32
    %c0_i32_0 = arith.constant 0 : i32
    return %arg0, %c0_i32 : i32, i32
  }
  func.func @transform_2(%arg0: i32) -> (i32, i32) {
    %c0_i32 = arith.constant 0 : i32
    %c0_i32_0 = arith.constant 0 : i32
    %c0_i32_1 = arith.constant 0 : i32
    return %c0_i32, %c0_i32_0 : i32, i32
  }
  func.func @transform_3(%arg0: i32) -> (i32, i32) {
    %c0_i32 = arith.constant 0 : i32
    %c0_i32_0 = arith.constant 0 : i32
    %c0_i32_1 = arith.constant 0 : i32
    return %c0_i32, %c0_i32_0 : i32, i32
  }
  func.func @transform_4(%arg0: i32) -> (i32, i32) {
    %c0_i32 = arith.constant 0 : i32
    %c0_i32_0 = arith.constant 0 : i32
    %c0_i32_1 = arith.constant 0 : i32
    return %c0_i32, %c0_i32_0 : i32, i32
  }
  func.func @transform_5(%arg0: i32) -> (i32, i32) {
    %c0_i32 = arith.constant 0 : i32
    %c0_i32_0 = arith.constant 0 : i32
    return %arg0, %c0_i32 : i32, i32
  }
}

</mosaic_0001>

<bundles_post_ra>
// kernel: tpu_custom_call.1
= control target key start
LH: loop header
LB: loop body
LE: loop exit
PB: predicated region body
PF: predicated region fallthrough
CT: control target
= control target key end

     0   :  { %v395_v3 = vmov 0.0|0.0   ;;  %vm396_vm0 = vmmov 0   ;;  %v397_v11 = vmov 0.0   ;;  %s562_s0 = inlined_call_operand.vmem [shape: f32[4,128], index: 0, kind: input, shape index: {}]   ;;  %s563_s1 = inlined_call_operand.vmem [shape: f32[4,128], index: 1, kind: input, shape index: {}]   ;;  %s564_s2 = inlined_call_operand.vmem [shape: f32[128,4], index: 2, kind: input, shape index: {}]   ;;  %s565_s3 = inlined_call_operand.vmem [shape: f32[128,4], index: 3, kind: input, shape index: {}]   ;;  %s566_s4 = inlined_call_operand.<no memory space> [shape: f32[1,1], index: 4, kind: input, shape index: {}]   ;;  %s567_s5 = inlined_call_operand.hbm [shape: f32[4,4], index: 5, kind: output, shape index: {}]  }
   0x1   :  { %v40_v0 = vld [vmem:[%s565_s3] sm:$0xff]  ;;  %v41_v1 = vld [vmem:[%s565_s3 + $0x8] sm:$0xff]  ;;  %319 = vmatprep.subr.bf16.mxu0 %v395_v3  ;;  %343 = vmatprep.subr.bf16.mxu1 %v395_v3  ;;  %v42_v6 = vld [vmem:[%s565_s3 + $0x10] sm:$0xff] }
   0x2   :  { %v23_v2 = vld [vmem:[%s564_s2] sm:$0xff]  ;;  %v320_v4 = vpack.c.bf16 %v41_v1, %v40_v0  ;;  %v24_v5 = vld [vmem:[%s564_s2 + $0x8] sm:$0xff]  ;;  %v43_v7 = vld [vmem:[%s565_s3 + $0x18] sm:$0xff]  ;;  %281 = vmatprep.mubr.msk.f32.mxu0 %vm396_vm0, %v397_v11  ;;  %316 = vmatprep.mubr.msk.f32.mxu1 %vm396_vm0, %v397_v11 }
   0x3   :  { %v344_v8 = vpack.c.bf16 %v24_v5, %v23_v2  ;;  %v25_v9 = vld [vmem:[%s564_s2 + $0x10] sm:$0xff]  ;;  %v26_v10 = vld [vmem:[%s564_s2 + $0x18] sm:$0xff]  ;;  %v323_v12 = vpack.c.bf16 %v43_v7, %v42_v6  ;;  %v44_v14 = vld [vmem:[%s565_s3 + $0x20] sm:$0xff] }
   0x4   :  { %321 = vmatpush3.bf16.msra.mxu0 %v320_v4  ;;  %v347_v13 = vpack.c.bf16 %v26_v10, %v25_v9  ;;  %v45_v15 = vld [vmem:[%s565_s3 + $0x28] sm:$0xff]  ;;  %v27_v16 = vld [vmem:[%s564_s2 + $0x20] sm:$0xff]  ;;  %v46_v20 = vld [vmem:[%s565_s3 + $0x30] sm:$0xff] }
   0x5   :  { %345 = vmatpush3.bf16.msra.mxu1 %v344_v8  ;;  %322 = vmatprep.subr.bf16.mxu0 %v395_v3  ;;  %v28_v17 = vld [vmem:[%s564_s2 + $0x28] sm:$0xff]  ;;  %v326_v18 = vpack.c.bf16 %v45_v15, %v44_v14  ;;  %v47_v21 = vld [vmem:[%s565_s3 + $0x38] sm:$0xff]  ;;  %v29_v22 = vld [vmem:[%s564_s2 + $0x30] sm:$0xff] }
   0x6   :  { %346 = vmatprep.subr.bf16.mxu1 %v395_v3  ;;  %v350_v19 = vpack.c.bf16 %v28_v17, %v27_v16  ;;  %v30_v23 = vld [vmem:[%s564_s2 + $0x38] sm:$0xff]  ;;  %v329_v24 = vpack.c.bf16 %v47_v21, %v46_v20 }
   0x8   :  { %324 = vmatpush3.bf16.msra.mxu0 %v323_v12 }
   0x9   :  { %348 = vmatpush3.bf16.msra.mxu1 %v347_v13  ;;  %325 = vmatprep.subr.bf16.mxu0 %v395_v3 }
   0xa   :  { %349 = vmatprep.subr.bf16.mxu1 %v395_v3 }
   0xc   :  { %327 = vmatpush3.bf16.msra.mxu0 %v326_v18 }
   0xd   :  { %11 = vsyncpa [#allocation4], 0  ;;  %351 = vmatpush3.bf16.msra.mxu1 %v350_v19  ;;  %328 = vmatprep.subr.bf16.mxu0 %v395_v3  ;;  %v353_v25 = vpack.c.bf16 %v30_v23, %v29_v22  ;;  %v48_v26 = vld [vmem:[%s565_s3 + $0x40] sm:$0xff]  ;;  %v49_v27 = vld [vmem:[%s565_s3 + $0x48] sm:$0xff]  ;;  %v197_v54 = vstv %s566_s4  ;;  %s398_s11 = smov [#allocation3]   ;;  %vm199_vm1 = vcmask 27648  }
   0xe   :  { %352 = vmatprep.subr.bf16.mxu1 %v395_v3  ;;  %v31_v28 = vld [vmem:[%s564_s2 + $0x40] sm:$0xff]  ;;  %v32_v29 = vld [vmem:[%s564_s2 + $0x48] sm:$0xff]  ;;  %v332_v30 = vpack.c.bf16 %v49_v27, %v48_v26  ;;  %v50_v32 = vld [vmem:[%s565_s3 + $0x50] sm:$0xff]  ;;  %s207_s12 = sshll.u32 %s398_s11, 4  ;;  %s208_s12 = int_to_ptr.vmem [resolvable:$true] %s207_s12 }
   0xf   :  { %v356_v31 = vpack.c.bf16 %v32_v29, %v31_v28  ;;  %v51_v33 = vld [vmem:[%s565_s3 + $0x58] sm:$0xff]  ;;  %v33_v34 = vld [vmem:[%s564_s2 + $0x50] sm:$0xff]  ;;  %v52_v38 = vld [vmem:[%s565_s3 + $0x60] sm:$0xff]  ;;  %p376_p1 = scmp.lt.s32.totalorder %s208_s12, %s208_s12 }
  0x10   :  { %330 = vmatpush3.bf16.msra.mxu0 %v329_v24  ;;  %v34_v35 = vld [vmem:[%s564_s2 + $0x58] sm:$0xff]  ;;  %v335_v36 = vpack.c.bf16 %v51_v33, %v50_v32  ;;  %v53_v39 = vld [vmem:[%s565_s3 + $0x68] sm:$0xff]  ;;  %v35_v40 = vld [vmem:[%s564_s2 + $0x60] sm:$0xff] }
  0x11   :  { %354 = vmatpush3.bf16.msra.mxu1 %v353_v25  ;;  %331 = vmatprep.subr.bf16.mxu0 %v395_v3  ;;  %v359_v37 = vpack.c.bf16 %v34_v35, %v33_v34  ;;  %v36_v41 = vld [vmem:[%s564_s2 + $0x68] sm:$0xff]  ;;  %v338_v42 = vpack.c.bf16 %v53_v39, %v52_v38  ;;  %v54_v44 = vld [vmem:[%s565_s3 + $0x70] sm:$0xff]  ;;  %v55_v45 = vld [vmem:[%s565_s3 + $0x78] sm:$0xff] }
  0x12   :  { %355 = vmatprep.subr.bf16.mxu1 %v395_v3  ;;  %v362_v43 = vpack.c.bf16 %v36_v41, %v35_v40  ;;  %v37_v46 = vld [vmem:[%s564_s2 + $0x70] sm:$0xff]  ;;  %v38_v47 = vld [vmem:[%s564_s2 + $0x78] sm:$0xff]  ;;  %v341_v48 = vpack.c.bf16 %v55_v45, %v54_v44  ;;  %v39_v50 = vld [vmem:[%s563_s1] sm:$0xf]  ;;  %s371_s1 = scalar_lea.vmem %s208_s12, 64 }
  0x13   :  { %v365_v49 = vpack.c.bf16 %v38_v47, %v37_v46  ;;  %v22_v51 = vld [vmem:[%s562_s0] sm:$0xf]  ;;  %p372_p0 = scmp.ne.s32.totalorder %s208_s12, %s371_s1  ;;  %p377_p2 = scmp.lt.s32.totalorder %s371_s1, %s371_s1 }
  0x14   :  { %333 = vmatpush3.bf16.msra.mxu0 %v332_v30 }
  0x15   :  { %357 = vmatpush3.bf16.msra.mxu1 %v356_v31  ;;  %334 = vmatprep.subr.bf16.mxu0 %v395_v3  ;;  %p378_p3 = por %p377_p2, %p376_p1 }
  0x16   :  { %358 = vmatprep.subr.bf16.mxu1 %v395_v3 }
  0x17   :  { %p379_p4 = pnand %p378_p3, %p372_p0 }
  0x18   :  { %336 = vmatpush3.bf16.msra.mxu0 %v335_v36 }
  0x19   :  { %360 = vmatpush3.bf16.msra.mxu1 %v359_v37  ;;  %337 = vmatprep.subr.bf16.mxu0 %v395_v3 }
  0x1a   :  { %361 = vmatprep.subr.bf16.mxu1 %v395_v3 }
  0x1c   :  { %339 = vmatpush3.bf16.msra.mxu0 %v338_v42 }
  0x1d   :  { %363 = vmatpush3.bf16.msra.mxu1 %v362_v43  ;;  %340 = vmatprep.subr.bf16.mxu0 %v395_v3 }
  0x1e   :  { %364 = vmatprep.subr.bf16.mxu1 %v395_v3 }
  0x20   :  { %342 = vmatpush3.bf16.msra.mxu0 %v341_v48 }
  0x21   :  { %366 = vmatpush3.bf16.msra.mxu1 %v365_v49 }
  0x23   :  { %282 = vmatmul.mubr.f32.vlgmr.msra.gmra.mrb[0].mxu0 %v39_v50 }
  0x24   :  { %317 = vmatmul.mubr.f32.vlgmr.msra.gmra.mrb[0].mxu1 %v22_v51 }
  0xf6   :  { %v122_v52 = vpop.f32.mrb[0].mxu0 }
  0xf7   :  { %v192_v53 = vpop.f32.mrb[0].mxu1  ;;  %v283_v55 = vpop.f32.mrb[1].mxu0 }
  0xf8   :  { %v193_v56 = vadd.f32 %v192_v53, %v122_v52  ;;  %v318_v57 = vpop.f32.mrb[1].mxu1 }
  0xfa   :  { %v198_v58 = vadd.f32 %v197_v54, %v193_v56 }
  0xfc   :  { %200 = vst.msk [vmem:[#allocation3] sm:$0xf] %vm199_vm1, %v198_v58 }
  0xfd   :  { %382 = shalt.err (!%p379_p4)
}
  0xfe   :  { %s383_s4 = scalar_lea.hbm %s567_s5, 64 }
  0xff   :  { %p384_p5 = scmp.ne.s32.totalorder %s567_s5, %s383_s4  ;;  %p387_p6 = scmp.lt.u32.totalorder %s383_s4, %s567_s5 }
 0x101   :  { %p389_p7 = pnand %p387_p6, %p384_p5 }
 0x103   :  { %392 = shalt.err (!%p389_p7)
}
 0x104   :  { %210 = dma.vmem_to_hbm [thread:$0]  %s208_s12, 64, %s567_s5, [#allocation4]  }
 0x105   :  { %393 = dma.done.wait [#allocation4], 64  }
 0x106   :  { %394 = vsyncadd [#allocation4], 4294967232 }
 0x107   :  { %214 = vsyncpa [#allocation4], 1 }

</bundles_post_ra>
